<compile_context>
chip_gen: v6e
topology: v6e:2x2x1
jax: 0.10.0
libtpu: 0.0.40
codegen_flags: <defaults>
</compile_context>

<pallas_src>
import functools

import jax
import jax.numpy as jnp
from jax.experimental import pallas as pl
from jax.experimental.pallas import tpu as pltpu


def _round_up(v, m):
    return (v + m - 1) // m * m


def _lstm_step_kernel(xg_ref, xres_ref, whh_ref, out_ref, h_scr, c_scr, *,
                      gate_act_dtype):
    """One LSTM time step for one batch shard.

    Grid = (batch_shards [parallel], time [arbitrary]). Time must stay the last
    grid axis (sequential, row-major traversal) for the scratch carry to be valid.

    xg_ref   : (Nb, 4H)  precomputed x @ W_ih + b (gate pre-acts), matmul_dtype
    xres_ref : (Nb, F)   original inputs for the residual add (F == H), f32
    whh_ref  : (H, 4H)   fused hidden->hidden weights, gate order (i, f, g, o),
                         resident in VMEM (constant index_map, single buffer)
    out_ref  : (Nb, H)   lstm output + residual (time-major layout outside)
    h_scr/c_scr : (Nb, H) f32 hidden / cell state carried across time steps.
    """
    @pl.when(pl.program_id(1) == 0)
    def _():
        h_scr[...] = jnp.zeros_like(h_scr)
        c_scr[...] = jnp.zeros_like(c_scr)

    hdim = h_scr.shape[-1]
    w = whh_ref[...]
    h_prev = h_scr[...]
    c_prev = c_scr[...]

    # One fused (Nb, H) x (H, 4H) MXU matmul per frame; f32 accumulation.
    gates = xg_ref[...].astype(jnp.float32) + jnp.dot(
        h_prev.astype(w.dtype), w, preferred_element_type=jnp.float32)

    # Transcendentals in gate_act_dtype (bf16 EUP path on v6e/v7x when requested);
    # state math stays f32.
    g = gates.astype(gate_act_dtype)
    i_g = jax.nn.sigmoid(g[:, 0 * hdim:1 * hdim]).astype(jnp.float32)
    f_g = jax.nn.sigmoid(g[:, 1 * hdim:2 * hdim]).astype(jnp.float32)
    g_g = jnp.tanh(g[:, 2 * hdim:3 * hdim]).astype(jnp.float32)
    o_g = jax.nn.sigmoid(g[:, 3 * hdim:4 * hdim]).astype(jnp.float32)

    c_new = f_g * c_prev + i_g * g_g
    h_new = o_g * jnp.tanh(c_new.astype(gate_act_dtype)).astype(jnp.float32)

    c_scr[...] = c_new
    h_scr[...] = h_new
    # residual=True and hidden_size == input feature size -> add input back.
    out_ref[...] = (h_new + xres_ref[...]).astype(out_ref.dtype)


def temporal_encoder_pallas(x, params, *, block_n=None,
                            matmul_dtype=jnp.bfloat16, gate_act_dtype=None):
    """TemporalEncoder forward. x: (N, T, F) f32 -> (N, T, H) with residual (H == F).

    matmul_dtype   : dtype for MXU inputs (W_hh, h, streamed xg); accumulation and
                     state math stay float32. float32 for near-reference results,
                     bfloat16 for MXU throughput + VMEM residency at real shapes.
    gate_act_dtype : dtype for the gate transcendentals; defaults to matmul_dtype.
    """
    w_ih, w_hh, b = params["w_ih_fused"], params["w_hh_fused"], params["b_fused"]
    n, t, f = x.shape
    h = w_hh.shape[0]
    assert w_ih.shape == (f, 4 * h) and w_hh.shape == (h, 4 * h) and b.shape == (1, 4 * h)
    assert f == h, "residual path requires hidden_size == input feature size"

    md = jnp.dtype(matmul_dtype)
    gd = jnp.dtype(gate_act_dtype) if gate_act_dtype is not None else md

    # Batch shard size up to the MXU height (128 v5e / 256 v6e-v7x), sublane-aligned.
    if block_n is None:
        block_n = min(256, _round_up(n, 8))
    block_n = _round_up(block_n, 8)
    n_pad = _round_up(n, block_n)

    # Time-major layout (mirrors PyTorch's x.permute(1, 0, 2)); each grid step then
    # touches one contiguous, lane-dense (block_n, .) tile — no sublane-strided
    # per-step slicing inside the kernel.
    xt = jnp.transpose(x, (1, 0, 2)).astype(jnp.float32)            # (T, N, F)

    # Hoisted input projection: one large (T*N, F) x (F, 4H) matmul outside the
    # serial recurrence, fused bias folded in, f32 accumulation; streamed to the
    # kernel in matmul_dtype (bf16 halves its HBM/VMEM footprint).
    xg = (jnp.dot(xt.astype(md), w_ih.astype(md),
                  preferred_element_type=jnp.float32)
          + b.astype(jnp.float32)).astype(md)                       # (T, N, 4H)

    if n_pad != n:
        xt = jnp.pad(xt, ((0, 0), (0, n_pad - n), (0, 0)))
        xg = jnp.pad(xg, ((0, 0), (0, n_pad - n), (0, 0)))

    n_shards = n_pad // block_n
    grid = (n_shards, t)

    # VMEM budget: resident single-buffered W_hh + double-buffered xg / x_res / out
    # blocks + f32 h/c scratch, +25% headroom.
    md_sz = md.itemsize
    vmem_need = (h * 4 * h * md_sz                  # W_hh, single buffer
                 + 2 * block_n * 4 * h * md_sz      # xg block (x2 pipeline buffers)
                 + 2 * block_n * f * 4              # residual input block
                 + 2 * block_n * h * 4              # output block
                 + 2 * block_n * h * 4)             # h/c scratch
    vmem_limit = int(min(max(int(vmem_need * 1.25), 32 << 20), 100 << 20))

    cost = pl.CostEstimate(
        flops=int(2 * n_pad * t * h * 4 * h + 10 * n_pad * t * h),
        transcendentals=int(5 * n_pad * t * h),
        bytes_accessed=int(t * n_pad * 4 * h * md_sz        # xg
                           + t * n_pad * f * 4              # residual input
                           + t * n_pad * h * 4              # output
                           + n_shards * h * 4 * h * md_sz)  # W_hh per shard
    )

    out_tm = pl.pallas_call(
        functools.partial(_lstm_step_kernel, gate_act_dtype=gd),
        out_shape=jax.ShapeDtypeStruct((t, n_pad, h), x.dtype),
        grid_spec=pltpu.PrefetchScalarGridSpec(
            num_scalar_prefetch=0,
            grid=grid,
            in_specs=[
                # leading time dim squeezed (block size 1) -> kernel sees (Nb, 4H)
                pl.BlockSpec((None, block_n, 4 * h), lambda bb, s: (s, bb, 0)),
                pl.BlockSpec((None, block_n, f), lambda bb, s: (s, bb, 0)),
                # constant index_map => weight stays resident; single buffer saves
                # 32 MiB at H=2048 bf16 (essential on v7x's 64 MiB per-TC VMEM).
                pl.BlockSpec((h, 4 * h), lambda bb, s: (0, 0),
                             pipeline_mode=pl.Buffered(1)),
            ],
            out_specs=pl.BlockSpec((None, block_n, h), lambda bb, s: (s, bb, 0)),
            scratch_shapes=[
                pltpu.VMEM((block_n, h), jnp.float32),  # hidden state
                pltpu.VMEM((block_n, h), jnp.float32),  # cell state
            ],
        ),
        compiler_params=pltpu.CompilerParams(
            # batch shards are independent (megacore on v7x); time is sequential
            # and MUST remain the last, "arbitrary" grid axis (scratch carry).
            dimension_semantics=("parallel", "arbitrary"),
            vmem_limit_bytes=vmem_limit),
        cost_estimate=cost,
    )(xg, xt, w_hh.astype(md))

    # Back to batch-major (N, T, H); drop batch padding.
    return jnp.transpose(out_tm[:, :n, :], (1, 0, 2))


def vibe_lstm_forward(x, params, *, matmul_dtype=jnp.bfloat16, gate_act_dtype=None):
    """VIBE_LSTM.forward (encoder part): returns flattened per-frame features of
    shape (batch * seq, feat), i.e. what would be fed to the SMPL Regressor."""
    lstm_feature = temporal_encoder_pallas(
        x, params, matmul_dtype=matmul_dtype, gate_act_dtype=gate_act_dtype)
    return lstm_feature.reshape(-1, lstm_feature.shape[-1])


def init_params(key, feat, hidden):
    """PyTorch LSTM-style init: uniform(-1/sqrt(H), 1/sqrt(H)).
    Weights are generated pre-fused and pre-transposed to (in, 4H), gate order
    (i, f, g, o) along the 4H axis. NOTE: real torch LSTM checkpoints store
    weight_ih/hh as (4H, in) — transpose them when converting."""
    k1, k2, k3, k4 = jax.random.split(key, 4)
    bound = float(hidden) ** -0.5
    w_ih = jax.random.uniform(k1, (feat, 4 * hidden), jnp.float32, -bound, bound)
    w_hh = jax.random.uniform(k2, (hidden, 4 * hidden), jnp.float32, -bound, bound)
    b_ih = jax.random.uniform(k3, (1, 4 * hidden), jnp.float32, -bound, bound)
    b_hh = jax.random.uniform(k4, (1, 4 * hidden), jnp.float32, -bound, bound)
    return {"w_ih_fused": w_ih, "w_hh_fused": w_hh, "b_fused": b_ih + b_hh}


def _reference_forward(x, params):
    """Pure-JAX f32 reference (lax.scan LSTM + residual) for correctness checking."""
    w_ih, w_hh, b = params["w_ih_fused"], params["w_hh_fused"], params["b_fused"]
    n, t, f = x.shape
    hdim = w_hh.shape[0]
    h0 = jnp.zeros((n, hdim), jnp.float32)
    c0 = jnp.zeros_like(h0)

    def step(carry, x_t):
        h, c = carry
        gates = x_t @ w_ih + h @ w_hh + b
        i = jax.nn.sigmoid(gates[:, :hdim])
        f_ = jax.nn.sigmoid(gates[:, hdim:2 * hdim])
        g_ = jnp.tanh(gates[:, 2 * hdim:3 * hdim])
        o = jax.nn.sigmoid(gates[:, 3 * hdim:])
        c_new = f_ * c + i * g_
        h_new = o * jnp.tanh(c_new)
        return (h_new, c_new), h_new + x_t  # residual

    (_, _), out_tm = jax.lax.scan(step, (h0, c0), jnp.transpose(x, (1, 0, 2)))
    return jnp.transpose(out_tm, (1, 0, 2)).reshape(-1, f)


if __name__ == "__main__":
    # Small shapes consistent with the module: (batch, seq, feat), hidden == feat.
    BATCH, SEQ, FEAT, HIDDEN = 2, 16, 32, 32

    key = jax.random.PRNGKey(0)
    k_x, k_p = jax.random.split(key)
    x = jax.random.normal(k_x, (BATCH, SEQ, FEAT), jnp.float32)
    params = init_params(k_p, FEAT, HIDDEN)

    ref = _reference_forward(x, params)

    # 1) f32-matmul / f32-gate path: close check against the pure-JAX reference
    #    (only differs by the reassociation of the hoisted input projection).
    out_f32 = jax.jit(functools.partial(
        vibe_lstm_forward, matmul_dtype=jnp.float32))(x, params)
    out_f32 = jax.block_until_ready(out_f32)
    assert out_f32.shape == (BATCH * SEQ, FEAT), out_f32.shape
    assert jnp.allclose(out_f32, ref, atol=1e-4, rtol=1e-4), "f32 path mismatch vs reference"

    # 2) default bf16-matmul path (v6e/v7x recommendation): bf16 MXU inputs, bf16 xg,
    #    bf16 gate transcendentals, f32 accumulation/state -> small compounded
    #    rounding error vs the f32 reference.
    out_bf16 = jax.jit(vibe_lstm_forward)(x, params)
    out_bf16 = jax.block_until_ready(out_bf16)
    assert out_bf16.shape == (BATCH * SEQ, FEAT), out_bf16.shape
    assert jnp.allclose(out_bf16, ref, atol=5e-2, rtol=5e-2), "bf16 path mismatch vs reference"

    print("KERNEL_OK")
</pallas_src>

<mosaic_0001>
module attributes {stable_mosaic.version = 11 : i64} {
  func.func @_lstm_step_kernel(%arg0: i32, %arg1: i32, %arg2: memref<1x8x128xf32, #tpu.memory_space<vmem>>, %arg3: memref<1x8x32xf32, #tpu.memory_space<vmem>>, %arg4: memref<32x128xf32, #tpu.memory_space<vmem>>, %arg5: memref<1x8x32xf32, #tpu.memory_space<vmem>>, %arg6: memref<8x32xf32, #tpu.memory_space<vmem>>, %arg7: memref<8x32xf32, #tpu.memory_space<vmem>>) attributes {dimension_semantics = [#tpu.dimension_semantics<parallel>, #tpu.dimension_semantics<arbitrary>], iteration_bounds = array<i64: 1, 16>, scalar_prefetch = 0 : i64, scratch_operands = 2 : i64, tpu.core_type = #tpu.core_type<tc>, window_params = [{transform_indices = @transform_0, window_bounds = array<i64: 1, 8, 128>}, {transform_indices = @transform_1, window_bounds = array<i64: 1, 8, 32>}, {pipeline_mode = #tpu.pipeline_mode<synchronous>, transform_indices = @transform_2, window_bounds = array<i64: 32, 128>}, {transform_indices = @transform_3, window_bounds = array<i64: 1, 8, 32>}]} {
    %c0_i32 = arith.constant 0 : i32
    %0 = arith.cmpi eq, %arg1, %c0_i32 : i32
    %1 = arith.extui %0 : i1 to i32
    %c0_i32_0 = arith.constant 0 : i32
    %2 = arith.cmpi ne, %1, %c0_i32_0 : i32
    scf.if %2 {
      %cst_22 = arith.constant 0.000000e+00 : f32
      %43 = vector.broadcast %cst_22 : f32 to vector<8x32xf32>
      %c0_23 = arith.constant 0 : index
      %c0_24 = arith.constant 0 : index
      %44 = vector.load %arg6[%c0_23, %c0_24] : memref<8x32xf32, #tpu.memory_space<vmem>>, vector<8x32xf32>
      tpu.vector_store %arg6[%c0_23, %c0_24], %43 {strides = array<i32>} : memref<8x32xf32, #tpu.memory_space<vmem>>, vector<8x32xf32>,
      %cst_25 = arith.constant 0.000000e+00 : f32
      %45 = vector.broadcast %cst_25 : f32 to vector<8x32xf32>
      %c0_26 = arith.constant 0 : index
      %c0_27 = arith.constant 0 : index
      %46 = vector.load %arg7[%c0_26, %c0_27] : memref<8x32xf32, #tpu.memory_space<vmem>>, vector<8x32xf32>
      tpu.vector_store %arg7[%c0_26, %c0_27], %45 {strides = array<i32>} : memref<8x32xf32, #tpu.memory_space<vmem>>, vector<8x32xf32>,
    } else {
    }
    %c0 = arith.constant 0 : index
    %c0_1 = arith.constant 0 : index
    %3 = vector.load %arg4[%c0, %c0_1] : memref<32x128xf32, #tpu.memory_space<vmem>>, vector<32x128xf32>
    %c0_2 = arith.constant 0 : index
    %c0_3 = arith.constant 0 : index
    %4 = vector.load %arg6[%c0_2, %c0_3] : memref<8x32xf32, #tpu.memory_space<vmem>>, vector<8x32xf32>
    %c0_4 = arith.constant 0 : index
    %c0_5 = arith.constant 0 : index
    %5 = vector.load %arg7[%c0_4, %c0_5] : memref<8x32xf32, #tpu.memory_space<vmem>>, vector<8x32xf32>
    %c0_6 = arith.constant 0 : index
    %c0_7 = arith.constant 0 : index
    %c0_8 = arith.constant 0 : index
    %6 = vector.load %arg2[%c0_6, %c0_7, %c0_8] : memref<1x8x128xf32, #tpu.memory_space<vmem>>, vector<1x8x128xf32>
    %7 = vector.shape_cast %6 : vector<1x8x128xf32> to vector<8x128xf32>
    %cst = arith.constant dense<0.000000e+00> : vector<8x128xf32>
    %8 = tpu.matmul %4, %3, %cst {dimension_numbers = #tpu.dot_dimension_numbers<[1], [0], [0], [1], [0, 0, 1, 1], [], []>} : vector<8x32xf32>, vector<32x128xf32>, vector<8x128xf32> -> vector<8x128xf32>
    %9 = arith.addf %7, %8 : vector<8x128xf32>
    %10 = vector.extract_strided_slice %9 {offsets = [0, 0], sizes = [8, 32], strides = [1, 1]} : vector<8x128xf32> to vector<8x32xf32>
    %11 = arith.negf %10 : vector<8x32xf32>
    %12 = math.exp %11 : vector<8x32xf32>
    %cst_9 = arith.constant 1.000000e+00 : f32
    %13 = vector.broadcast %cst_9 : f32 to vector<8x32xf32>
    %14 = arith.addf %13, %12 : vector<8x32xf32>
    %15 = arith.divf %13, %14 : vector<8x32xf32>
    %16 = vector.extract_strided_slice %9 {offsets = [0, 32], sizes = [8, 32], strides = [1, 1]} : vector<8x128xf32> to vector<8x32xf32>
    %17 = arith.negf %16 : vector<8x32xf32>
    %18 = math.exp %17 : vector<8x32xf32>
    %cst_10 = arith.constant 1.000000e+00 : f32
    %19 = vector.broadcast %cst_10 : f32 to vector<8x32xf32>
    %20 = arith.addf %19, %18 : vector<8x32xf32>
    %21 = arith.divf %19, %20 : vector<8x32xf32>
    %22 = vector.extract_strided_slice %9 {offsets = [0, 64], sizes = [8, 32], strides = [1, 1]} : vector<8x128xf32> to vector<8x32xf32>
    %23 = math.tanh %22 : vector<8x32xf32>
    %24 = vector.extract_strided_slice %9 {offsets = [0, 96], sizes = [8, 32], strides = [1, 1]} : vector<8x128xf32> to vector<8x32xf32>
    %25 = arith.negf %24 : vector<8x32xf32>
    %26 = math.exp %25 : vector<8x32xf32>
    %cst_11 = arith.constant 1.000000e+00 : f32
    %27 = vector.broadcast %cst_11 : f32 to vector<8x32xf32>
    %28 = arith.addf %27, %26 : vector<8x32xf32>
    %29 = arith.divf %27, %28 : vector<8x32xf32>
    %30 = arith.mulf %21, %5 : vector<8x32xf32>
    %31 = arith.mulf %15, %23 : vector<8x32xf32>
    %32 = arith.addf %30, %31 : vector<8x32xf32>
    %33 = math.tanh %32 : vector<8x32xf32>
    %34 = arith.mulf %29, %33 : vector<8x32xf32>
    %c0_12 = arith.constant 0 : index
    %c0_13 = arith.constant 0 : index
    %35 = vector.load %arg7[%c0_12, %c0_13] : memref<8x32xf32, #tpu.memory_space<vmem>>, vector<8x32xf32>
    tpu.vector_store %arg7[%c0_12, %c0_13], %32 {strides = array<i32>} : memref<8x32xf32, #tpu.memory_space<vmem>>, vector<8x32xf32>,
    %c0_14 = arith.constant 0 : index
    %c0_15 = arith.constant 0 : index
    %36 = vector.load %arg6[%c0_14, %c0_15] : memref<8x32xf32, #tpu.memory_space<vmem>>, vector<8x32xf32>
    tpu.vector_store %arg6[%c0_14, %c0_15], %34 {strides = array<i32>} : memref<8x32xf32, #tpu.memory_space<vmem>>, vector<8x32xf32>,
    %c0_16 = arith.constant 0 : index
    %c0_17 = arith.constant 0 : index
    %c0_18 = arith.constant 0 : index
    %37 = vector.load %arg3[%c0_16, %c0_17, %c0_18] : memref<1x8x32xf32, #tpu.memory_space<vmem>>, vector<1x8x32xf32>
    %38 = vector.shape_cast %37 : vector<1x8x32xf32> to vector<8x32xf32>
    %39 = arith.addf %34, %38 : vector<8x32xf32>
    %c0_19 = arith.constant 0 : index
    %c0_20 = arith.constant 0 : index
    %c0_21 = arith.constant 0 : index
    %40 = vector.load %arg5[%c0_19, %c0_20, %c0_21] : memref<1x8x32xf32, #tpu.memory_space<vmem>>, vector<1x8x32xf32>
    %41 = vector.shape_cast %40 : vector<1x8x32xf32> to vector<8x32xf32>
    %42 = vector.shape_cast %39 : vector<8x32xf32> to vector<1x8x32xf32>
    tpu.vector_store %arg5[%c0_19, %c0_20, %c0_21], %42 {strides = array<i32>} : memref<1x8x32xf32, #tpu.memory_space<vmem>>, vector<1x8x32xf32>,
    return
  }
  func.func @transform_0(%arg0: i32, %arg1: i32) -> (i32, i32, i32) {
    %c0_i32 = arith.constant 0 : i32
    %c0_i32_0 = arith.constant 0 : i32
    return %arg1, %arg0, %c0_i32 : i32, i32, i32
  }
  func.func @transform_1(%arg0: i32, %arg1: i32) -> (i32, i32, i32) {
    %c0_i32 = arith.constant 0 : i32
    %c0_i32_0 = arith.constant 0 : i32
    return %arg1, %arg0, %c0_i32 : i32, i32, i32
  }
  func.func @transform_2(%arg0: i32, %arg1: i32) -> (i32, i32) {
    %c0_i32 = arith.constant 0 : i32
    %c0_i32_0 = arith.constant 0 : i32
    %c0_i32_1 = arith.constant 0 : i32
    return %c0_i32, %c0_i32_0 : i32, i32
  }
  func.func @transform_3(%arg0: i32, %arg1: i32) -> (i32, i32, i32) {
    %c0_i32 = arith.constant 0 : i32
    %c0_i32_0 = arith.constant 0 : i32
    return %arg1, %arg0, %c0_i32 : i32, i32, i32
  }
}

</mosaic_0001>

<bundles_post_ra>
// kernel: vibe_lstm_forward.1
= control target key start
LH: loop header
LB: loop body
LE: loop exit
PB: predicated region body
PF: predicated region fallthrough
CT: control target
= control target key end

     0   :  { %s569_s12 = smov 0   ;;  %s571_s13 = smov 0   ;;  %s636_s0 = inlined_call_operand.vmem [shape: f32[16,8,128], index: 0, kind: input, shape index: {}]   ;;  %s637_s1 = inlined_call_operand.vmem [shape: f32[16,8,32], index: 1, kind: input, shape index: {}]   ;;  %s638_s2 = inlined_call_operand.vmem [shape: f32[32,128], index: 2, kind: input, shape index: {}]   ;;  %s639_s3 = inlined_call_operand.vmem [shape: f32[16,8,32], index: 3, kind: output, shape index: {}]  }
   0x1   :  { %s573_s14 = smov 0  }
   0x2 LB: > { %s22_s15 = sadd.s32 1, %s537_s13  ;;  %p456_p0 = scmp.ge.s32.totalorder %s541_s14, 1  ;;  %s541_s14 = sphi %s573_s14, %s13_s14   ;;  %s537_s13 = sphi %s571_s13, %s641_s13   ;;  %s533_s12 = sphi %s569_s12, %s640_s12  }
   0x3   : > { %p23_p1 = scmp.ge.s32.totalorder %s22_s15, 16  ;;  %p169_p2 = scmp.lt.s32.totalorder %s541_s14, 17 }
   0x5   : > { %s643_s15 = smov (%p23_p1, %s22_s15), 0  ;;  %p170_p3 = pnand %p456_p0, %p169_p2 }
   0x6   : > { %p204_p4 = scmp.lt.s32.totalorder (!%p170_p3), %s533_s12, 15  ;;  %p460_p5 = scmp.ne.s32.totalorder (!%p170_p3), %s533_s12, 0 }
   0x7   : > { %173 = sbr.rel (%p170_p3) target bundleno = 721 (0x2d1), region = 32 }
   0xc   : > { %s205_s16 = scalar_select %p204_p4, %s533_s12, 15 }
   0xd   : > { %228 = sbr.rel (%p460_p5) target bundleno = 20 (0x14), region = 36 }
   0xe   : > { %s587_s17 = sshll.u32 %s205_s16, 3 }
   0xf   : > { %s210_s20 = scalar_lea.vmem %s636_s0, %s587_s17  ;;  %s217_s23 = scalar_lea.vmem %s637_s1, %s587_s17 }
  0x10   : > { %s224_s26 = scalar_lea.vmem %s639_s3, %s587_s17 }
  0x12   : > { %vm229_vm0 = vcmask 261120   ;;  %v543_v0 = vmov 0.0  }
  0x13   : > { %230 = vst.msk [vmem:[#allocation2] sm:$0xff] %vm229_vm0, %v543_v0  ;;  %231 = vst.msk [vmem:[#allocation3] sm:$0xff] %vm229_vm0, %v543_v0 }
  0x14 PF: > { %v235_v1 = vld [vmem:[%s638_s2 + $0x18] sm:$0xff]  ;;  %v544_v2 = vmov 0.0   ;;  %v234_v3 = vld [vmem:[%s638_s2 + $0x10] sm:$0xff]  ;;  %vm545_vm1 = vmmov 0   ;;  %v233_v4 = vld [vmem:[%s638_s2 + $0x8] sm:$0xff]  ;;  %vm239_vm2 = vcmask 261120  }
  0x15   : > { %470 = vmatprep.subr.mxu0 %v544_v2  ;;  %478 = vmatprep.mubr.msk.f32.mxu0 %vm545_vm1, %v544_v2  ;;  %v232_v5 = vld [vmem:[%s638_s2] sm:$0xff]  ;;  %s546_s8 = smov 64   ;;  %s547_s9 = smov 32  }
  0x16   : > { %471 = vmatpush3.msra.mxu0 %v235_v1  ;;  %v238_v7 = vld [vmem:[%s210_s20] sm:$0xff]  ;;  %s548_s12 = smov 96  }
  0x17   : > { %472 = vmatprep.subr.mxu0 %v544_v2  ;;  %v352_v19 = vld [vmem:[%s217_s23] sm:$0xff] }
  0x18   : > { %473 = vmatpush3.msra.mxu0 %v234_v3 }
  0x19   : > { %474 = vmatprep.subr.mxu0 %v544_v2 }
  0x1a   : > { %475 = vmatpush3.msra.mxu0 %v233_v4  ;;  %v236_v6 = vld [vmem:[#allocation2] sm:$0xff]  ;;  %v237_v12 = vld [vmem:[#allocation3] sm:$0xff] }
  0x1b   : > { %476 = vmatprep.subr.mxu0 %v544_v2 }
  0x1c   : > { %477 = vmatpush3.msra.mxu0 %v232_v5 }
  0x1d   : > { %479 = vmatmul.mubr.msk.f32.vlgmr.msra.gmra.mxu0 %vm239_vm2, %v236_v6 }
  0xdd   : > { %v309_v8 = vpop.f32.mrf.mxu0 }
  0xde   : > { %v313_v9 = vadd.f32 %v309_v8, %v238_v7 }
  0xdf   : > { %v480_v10 = vpop.f32.mrf.mxu0 }
  0xe0   : > { %511 = vtanh.f32 %v313_v9  ;;  %v462_v13 = vmul.f32 -1.442695, %v313_v9 }
  0xe2   : > { %513 = vpow2.f32 %v462_v13 }
  0xed   : > { %v512_v11 = vpop.eup %511 }
  0xee   : > { %327 = vrot.lane.b32.xlu0 %v512_v11, %s546_s8 }
  0xef   : > { %v514_v14 = vpop.eup %513 }
  0xf0   : > { %v317_v15 = vadd.f32 1.0, %v514_v14 }
  0xf2   : > { %322 = vrot.lane.b32.xlu0 %v237_v12, %s547_s9  ;;  %515 = vrcp.f32 %v317_v15 }
  0xf6   : > { %354 = vrot.lane.b32.xlu0 %v352_v19, %s548_s12 }
  0xff   : > { %v516_v16 = vpop.eup %515 }
 0x160   : > { %v328_v17 = vpop.permute.xlu0 %327 }
 0x161   : > { %v330_v18 = vmul.f32 %v516_v16, %v328_v17 }
 0x163   : > { %332 = vrot.lane.b32.xlu1 %v330_v18, %s547_s9 }
 0x164   : > { %v323_v20 = vpop.permute.xlu0 %322 }
 0x165   : > { %v325_v21 = vmul.f32 %v516_v16, %v323_v20 }
 0x168   : > { %v355_v26 = vpop.permute.xlu0 %354 }
 0x1d5   : > { %v333_v22 = vpop.permute.xlu1 %332 }
 0x1d6   : > { %v335_v23 = vadd.f32 %v333_v22, %v325_v21 }
 0x1d8   : > { %517 = vtanh.f32 %v335_v23 }
 0x1e5   : > { %v518_v24 = vpop.eup %517 }
 0x1e6   : > { %338 = vrot.lane.b32.xlu1 %v518_v24, %s546_s8 }
 0x1ea   : > { %343 = vrot.lane.b32.xlu1 %v335_v23, %s548_s12 }
 0x258   : > { %v339_v25 = vpop.permute.xlu1 %338 }
 0x259   : > { %v341_v27 = vmul.f32 %v516_v16, %v339_v25 }
 0x25b   : > { %v357_v28 = vadd.f32 %v355_v26, %v341_v27  ;;  %348 = vrot.lane.b32.xlu0 %v341_v27, %s547_s9 }
 0x25c   : > { %v344_v29 = vpop.permute.xlu1 %343 }
 0x25d   : > { %346 = vst.msk [vmem:[#allocation3] sm:$0xff] %vm239_vm2, %v344_v29  ;;  %359 = vrot.lane.b32.xlu1 %v357_v28, %s547_s9 }
 0x2cd   : > { %v349_v30 = vpop.permute.xlu0 %348 }
 0x2ce   : > { %351 = vst.msk [vmem:[#allocation2] sm:$0xff] %vm239_vm2, %v349_v30 }
 0x2cf   : > { %v360_v31 = vpop.permute.xlu1 %359 }
 0x2d0   : > { %362 = vst.msk [vmem:[%s224_s26] sm:$0xff] %vm239_vm2, %v360_v31 }
 0x2d1 PF: > { %s13_s14 = sadd.s32 1, %s541_s14   ;;  %s640_s12 = smov %s537_s13 }
 0x2d2   : > { %p10_p6 = scmp.ge.s32.totalorder %s13_s14, 18   ;;  %s641_s13 = smov %s643_s15 }
 0x2d4   :  { %12 = sbr.rel (!%p10_p6) target bundleno = 2 (0x2), region = 69 }

</bundles_post_ra>
